<compile_context>
chip_gen: v7x
topology: tpu7x:2x2x1
jax: 0.10.0
libtpu: 0.0.40
codegen_flags: <defaults>
</compile_context>

<pallas_src>
import functools

import numpy as np
import jax
import jax.numpy as jnp
from jax import lax
from jax.experimental import pallas as pl
from jax.experimental.pallas import tpu as pltpu


def _round_up(n, m):
    return ((n + m - 1) // m) * m


# ---------------------------------------------------------------------------
# MADE masks (natural ordering; deterministic cycling hidden degrees)
# ---------------------------------------------------------------------------
def build_made_masks(x_dim, hiddens):
    degrees = [np.arange(x_dim)]                       # input degrees 0..X_dim-1
    for h in hiddens:
        degrees.append(np.arange(h) % max(1, x_dim - 1))
    masks = []
    for l in range(len(hiddens)):                      # input->h1, h1->h2 : >=
        masks.append((degrees[l + 1][None, :] >= degrees[l][:, None]).astype(np.float32))
    # last hidden -> output : strict >, output degrees == input degrees
    masks.append((degrees[0][None, :] > degrees[-1][:, None]).astype(np.float32))
    return masks                                       # list of (in, out) masks


# ---------------------------------------------------------------------------
# Parameters (weights stored (in, out); equivalent to PyTorch's (out, in).T)
# ---------------------------------------------------------------------------
def init_made_params(key, x_dim, hiddens, ctx_dim, scale=0.05):
    assert len(hiddens) == 2, "module default is two hidden layers [200, 220]"
    h1, h2 = hiddens
    ks = jax.random.split(key, 10)
    n = jax.random.normal
    return dict(
        w1=scale * n(ks[0], (x_dim, h1), jnp.float32),
        b1=scale * n(ks[1], (h1,), jnp.float32),
        wc1=scale * n(ks[2], (ctx_dim, h1), jnp.float32),   # context -> hidden 1
        bc1=scale * n(ks[3], (h1,), jnp.float32),
        w2=scale * n(ks[4], (h1, h2), jnp.float32),
        b2=scale * n(ks[5], (h2,), jnp.float32),
        w3=scale * n(ks[6], (h2, x_dim), jnp.float32),
        b3=scale * n(ks[7], (x_dim,), jnp.float32),
        wc3=scale * n(ks[8], (ctx_dim, x_dim), jnp.float32),  # context -> output skip
        bc3=scale * n(ks[9], (x_dim,), jnp.float32),
    )


def prepare_kernel_params(params, masks, x_dim, hiddens, ctx_dim):
    """Fold masks into weights, merge biases, zero-pad all feature dims to 128."""
    h1, h2 = hiddens
    xp = _round_up(x_dim, 128)
    h1p = _round_up(h1, 128)
    h2p = _round_up(h2, 128)
    cp = _round_up(ctx_dim, 128)
    m1, m2, m3 = [jnp.asarray(m) for m in masks]

    def pad2(a, r, c):
        return jnp.pad(a, ((0, r - a.shape[0]), (0, c - a.shape[1])))

    def pad1(a, c):
        return jnp.pad(a, (0, c - a.shape[0])).reshape(1, c)

    return dict(
        w1=pad2(params["w1"] * m1, xp, h1p),
        wc1=pad2(params["wc1"], cp, h1p),
        b1=pad1(params["b1"] + params["bc1"], h1p),
        w2=pad2(params["w2"] * m2, h1p, h2p),
        b2=pad1(params["b2"], h2p),
        w3=pad2(params["w3"] * m3, h2p, xp),
        wc3=pad2(params["wc3"], cp, xp),
        b3=pad1(params["b3"] + params["bc3"], xp),
    )


# ---------------------------------------------------------------------------
# Fused Pallas kernel: whole conditional MADE per batch-row tile
# ---------------------------------------------------------------------------
def _made_kernel(x_ref, z_ref, w1_ref, wc1_ref, b1_ref, w2_ref, b2_ref,
                 w3_ref, wc3_ref, b3_ref, o_ref):
    x = x_ref[...]
    z = z_ref[...]
    h1 = jnp.dot(x, w1_ref[...], preferred_element_type=jnp.float32)
    h1 = h1 + jnp.dot(z, wc1_ref[...], preferred_element_type=jnp.float32)
    h1 = jnp.maximum(h1 + b1_ref[...], 0.0)
    h2 = jnp.dot(h1, w2_ref[...], preferred_element_type=jnp.float32) + b2_ref[...]
    h2 = jnp.maximum(h2, 0.0)
    o = jnp.dot(h2, w3_ref[...], preferred_element_type=jnp.float32)
    o = o + jnp.dot(z, wc3_ref[...], preferred_element_type=jnp.float32)
    o_ref[...] = (o + b3_ref[...]).astype(o_ref.dtype)


def made_logits_pallas(x, z, kp, *, x_dim):
    """x: (B, X_dim) in [0,1]; z: (B, D) context.  Returns Bernoulli logits (B, X_dim)."""
    b = x.shape[0]
    xp, h1p = kp["w1"].shape
    h2p = kp["w2"].shape[1]
    cp = kp["wc1"].shape[0]

    tm = 128 if b >= 128 else 8                 # row tile; keeps grid >= 2 for small B
    bp = _round_up(b, tm)
    x_pad = jnp.pad(x, ((0, bp - b), (0, xp - x.shape[1])))
    z_pad = jnp.pad(z, ((0, bp - b), (0, cp - z.shape[1])))

    out = pl.pallas_call(
        _made_kernel,
        out_shape=jax.ShapeDtypeStruct((bp, xp), jnp.float32),
        grid=(bp // tm,),
        in_specs=[
            pl.BlockSpec((tm, xp), lambda i: (i, 0)),
            pl.BlockSpec((tm, cp), lambda i: (i, 0)),
            pl.BlockSpec((xp, h1p), lambda i: (0, 0)),
            pl.BlockSpec((cp, h1p), lambda i: (0, 0)),
            pl.BlockSpec((1, h1p), lambda i: (0, 0)),
            pl.BlockSpec((h1p, h2p), lambda i: (0, 0)),
            pl.BlockSpec((1, h2p), lambda i: (0, 0)),
            pl.BlockSpec((h2p, xp), lambda i: (0, 0)),
            pl.BlockSpec((cp, xp), lambda i: (0, 0)),
            pl.BlockSpec((1, xp), lambda i: (0, 0)),
        ],
        out_specs=pl.BlockSpec((tm, xp), lambda i: (i, 0)),
        compiler_params=pltpu.CompilerParams(dimension_semantics=("parallel",)),
    )(x_pad, z_pad, kp["w1"], kp["wc1"], kp["b1"], kp["w2"], kp["b2"],
      kp["w3"], kp["wc3"], kp["b3"])
    return out[:b, :x_dim]


# ---------------------------------------------------------------------------
# Distribution wrapper (what the module's forward(z) returns)
# ---------------------------------------------------------------------------
class AutoRegressiveBernoulli:
    """Lightweight stand-in for AutoRegressiveDistribution(dist_type='bernoulli')."""

    def __init__(self, context, kernel_params, x_dim, x_shape, logits_fn):
        self.context = context
        self._kp = kernel_params
        self._x_dim = x_dim
        self._x_shape = x_shape
        self._logits_fn = logits_fn

    def logits(self, x):
        b = x.shape[0]
        flat = self._logits_fn(x.reshape(b, self._x_dim), self.context, self._kp)
        return flat.reshape((b,) + self._x_shape)

    def log_prob(self, x):
        b = x.shape[0]
        xf = x.reshape(b, self._x_dim)
        lg = self._logits_fn(xf, self.context, self._kp)
        lp = xf * jax.nn.log_sigmoid(lg) + (1.0 - xf) * jax.nn.log_sigmoid(-lg)
        return lp.sum(axis=-1)


def conditional_bernoulli_block_made_forward(z, kernel_params, x_dim, x_shape, logits_fn):
    # Mirrors ConditionalBernoulliBlockMADE.forward(z): returns p(x | z).
    return AutoRegressiveBernoulli(z, kernel_params, x_dim, x_shape, logits_fn)


# ---------------------------------------------------------------------------
# Pure-JAX reference (correctness check only)
# ---------------------------------------------------------------------------
def made_logits_ref(x, z, raw, masks):
    m1, m2, m3 = [jnp.asarray(m) for m in masks]
    hp = lax.Precision.HIGHEST
    h1 = jax.nn.relu(jnp.dot(x, raw["w1"] * m1, precision=hp)
                     + jnp.dot(z, raw["wc1"], precision=hp)
                     + raw["b1"] + raw["bc1"])
    h2 = jax.nn.relu(jnp.dot(h1, raw["w2"] * m2, precision=hp) + raw["b2"])
    return (jnp.dot(h2, raw["w3"] * m3, precision=hp)
            + jnp.dot(z, raw["wc3"], precision=hp) + raw["b3"] + raw["bc3"])


if __name__ == "__main__":
    # Small shapes consistent with the module: X_dim = n_channels * image_w_h^2,
    # default hidden sizes [200, 220], context = latent_dim.
    N_CHANNELS, IMAGE_W_H, LATENT_DIM = 1, 16, 16
    HIDDENS = [200, 220]
    X_DIM = N_CHANNELS * IMAGE_W_H * IMAGE_W_H
    X_SHAPE = (N_CHANNELS, IMAGE_W_H, IMAGE_W_H)
    B = 16

    key = jax.random.PRNGKey(0)
    kx, kz, kp = jax.random.split(key, 3)
    z = jax.random.normal(kz, (B, LATENT_DIM), jnp.float32)
    x = jax.random.bernoulli(kx, 0.5, (B,) + X_SHAPE).astype(jnp.float32)

    masks = build_made_masks(X_DIM, HIDDENS)
    raw_params = init_made_params(kp, X_DIM, HIDDENS, LATENT_DIM)
    kernel_params = prepare_kernel_params(raw_params, masks, X_DIM, HIDDENS, LATENT_DIM)

    logits_fn = jax.jit(functools.partial(made_logits_pallas, x_dim=X_DIM))

    p_x_z = conditional_bernoulli_block_made_forward(
        z, kernel_params, X_DIM, X_SHAPE, logits_fn)

    logits = jax.block_until_ready(p_x_z.logits(x))
    logp = jax.block_until_ready(p_x_z.log_prob(x))
    assert logits.shape == (B,) + X_SHAPE, logits.shape
    assert logp.shape == (B,), logp.shape
    assert bool(jnp.all(jnp.isfinite(logp)))

    ref = made_logits_ref(x.reshape(B, X_DIM), z, raw_params, masks)
    rel_err = float(jnp.max(jnp.abs(logits.reshape(B, X_DIM) - ref))
                    / (jnp.max(jnp.abs(ref)) + 1e-6))
    assert rel_err < 1e-3, f"mismatch vs reference: rel_err={rel_err}"
    print("KERNEL_OK")
</pallas_src>

<mosaic_0001>
module attributes {stable_mosaic.version = 11 : i64} {
  func.func @_made_kernel(%arg0: i32, %arg1: memref<8x256xf32, #tpu.memory_space<vmem>>, %arg2: memref<8x128xf32, #tpu.memory_space<vmem>>, %arg3: memref<256x256xf32, #tpu.memory_space<vmem>>, %arg4: memref<128x256xf32, #tpu.memory_space<vmem>>, %arg5: memref<1x256xf32, #tpu.memory_space<vmem>>, %arg6: memref<256x256xf32, #tpu.memory_space<vmem>>, %arg7: memref<1x256xf32, #tpu.memory_space<vmem>>, %arg8: memref<256x256xf32, #tpu.memory_space<vmem>>, %arg9: memref<128x256xf32, #tpu.memory_space<vmem>>, %arg10: memref<1x256xf32, #tpu.memory_space<vmem>>, %arg11: memref<8x256xf32, #tpu.memory_space<vmem>>) attributes {dimension_semantics = [#tpu.dimension_semantics<parallel>], iteration_bounds = array<i64: 2>, scalar_prefetch = 0 : i64, scratch_operands = 0 : i64, tpu.core_type = #tpu.core_type<tc>, window_params = [{transform_indices = @transform_0, window_bounds = array<i64: 8, 256>}, {transform_indices = @transform_1, window_bounds = array<i64: 8, 128>}, {pipeline_mode = #tpu.pipeline_mode<synchronous>, transform_indices = @transform_2, window_bounds = array<i64: 256, 256>}, {pipeline_mode = #tpu.pipeline_mode<synchronous>, transform_indices = @transform_3, window_bounds = array<i64: 128, 256>}, {pipeline_mode = #tpu.pipeline_mode<synchronous>, transform_indices = @transform_4, window_bounds = array<i64: 1, 256>}, {pipeline_mode = #tpu.pipeline_mode<synchronous>, transform_indices = @transform_5, window_bounds = array<i64: 256, 256>}, {pipeline_mode = #tpu.pipeline_mode<synchronous>, transform_indices = @transform_6, window_bounds = array<i64: 1, 256>}, {pipeline_mode = #tpu.pipeline_mode<synchronous>, transform_indices = @transform_7, window_bounds = array<i64: 256, 256>}, {pipeline_mode = #tpu.pipeline_mode<synchronous>, transform_indices = @transform_8, window_bounds = array<i64: 128, 256>}, {pipeline_mode = #tpu.pipeline_mode<synchronous>, transform_indices = @transform_9, window_bounds = array<i64: 1, 256>}, {transform_indices = @transform_10, window_bounds = array<i64: 8, 256>}]} {
    %c0 = arith.constant 0 : index
    %c0_0 = arith.constant 0 : index
    %0 = vector.load %arg1[%c0, %c0_0] : memref<8x256xf32, #tpu.memory_space<vmem>>, vector<8x256xf32>
    %c0_1 = arith.constant 0 : index
    %c0_2 = arith.constant 0 : index
    %1 = vector.load %arg2[%c0_1, %c0_2] : memref<8x128xf32, #tpu.memory_space<vmem>>, vector<8x128xf32>
    %c0_3 = arith.constant 0 : index
    %c0_4 = arith.constant 0 : index
    %2 = vector.load %arg3[%c0_3, %c0_4] : memref<256x256xf32, #tpu.memory_space<vmem>>, vector<256x256xf32>
    %cst = arith.constant dense<0.000000e+00> : vector<8x256xf32>
    %3 = tpu.matmul %0, %2, %cst {dimension_numbers = #tpu.dot_dimension_numbers<[1], [0], [0], [1], [0, 0, 1, 1], [], []>} : vector<8x256xf32>, vector<256x256xf32>, vector<8x256xf32> -> vector<8x256xf32>
    %c0_5 = arith.constant 0 : index
    %c0_6 = arith.constant 0 : index
    %4 = vector.load %arg4[%c0_5, %c0_6] : memref<128x256xf32, #tpu.memory_space<vmem>>, vector<128x256xf32>
    %cst_7 = arith.constant dense<0.000000e+00> : vector<8x256xf32>
    %5 = tpu.matmul %1, %4, %cst_7 {dimension_numbers = #tpu.dot_dimension_numbers<[1], [0], [0], [1], [0, 0, 1, 1], [], []>} : vector<8x128xf32>, vector<128x256xf32>, vector<8x256xf32> -> vector<8x256xf32>
    %6 = arith.addf %3, %5 : vector<8x256xf32>
    %c0_8 = arith.constant 0 : index
    %c0_9 = arith.constant 0 : index
    %7 = vector.load %arg5[%c0_8, %c0_9] : memref<1x256xf32, #tpu.memory_space<vmem>>, vector<1x256xf32>
    %8 = vector.broadcast %7 : vector<1x256xf32> to vector<8x256xf32>
    %9 = arith.addf %6, %8 : vector<8x256xf32>
    %cst_10 = arith.constant 0.000000e+00 : f32
    %10 = vector.broadcast %cst_10 : f32 to vector<8x256xf32>
    %11 = arith.maximumf %9, %10 : vector<8x256xf32>
    %c0_11 = arith.constant 0 : index
    %c0_12 = arith.constant 0 : index
    %12 = vector.load %arg6[%c0_11, %c0_12] : memref<256x256xf32, #tpu.memory_space<vmem>>, vector<256x256xf32>
    %cst_13 = arith.constant dense<0.000000e+00> : vector<8x256xf32>
    %13 = tpu.matmul %11, %12, %cst_13 {dimension_numbers = #tpu.dot_dimension_numbers<[1], [0], [0], [1], [0, 0, 1, 1], [], []>} : vector<8x256xf32>, vector<256x256xf32>, vector<8x256xf32> -> vector<8x256xf32>
    %c0_14 = arith.constant 0 : index
    %c0_15 = arith.constant 0 : index
    %14 = vector.load %arg7[%c0_14, %c0_15] : memref<1x256xf32, #tpu.memory_space<vmem>>, vector<1x256xf32>
    %15 = vector.broadcast %14 : vector<1x256xf32> to vector<8x256xf32>
    %16 = arith.addf %13, %15 : vector<8x256xf32>
    %cst_16 = arith.constant 0.000000e+00 : f32
    %17 = vector.broadcast %cst_16 : f32 to vector<8x256xf32>
    %18 = arith.maximumf %16, %17 : vector<8x256xf32>
    %c0_17 = arith.constant 0 : index
    %c0_18 = arith.constant 0 : index
    %19 = vector.load %arg8[%c0_17, %c0_18] : memref<256x256xf32, #tpu.memory_space<vmem>>, vector<256x256xf32>
    %cst_19 = arith.constant dense<0.000000e+00> : vector<8x256xf32>
    %20 = tpu.matmul %18, %19, %cst_19 {dimension_numbers = #tpu.dot_dimension_numbers<[1], [0], [0], [1], [0, 0, 1, 1], [], []>} : vector<8x256xf32>, vector<256x256xf32>, vector<8x256xf32> -> vector<8x256xf32>
    %c0_20 = arith.constant 0 : index
    %c0_21 = arith.constant 0 : index
    %21 = vector.load %arg9[%c0_20, %c0_21] : memref<128x256xf32, #tpu.memory_space<vmem>>, vector<128x256xf32>
    %cst_22 = arith.constant dense<0.000000e+00> : vector<8x256xf32>
    %22 = tpu.matmul %1, %21, %cst_22 {dimension_numbers = #tpu.dot_dimension_numbers<[1], [0], [0], [1], [0, 0, 1, 1], [], []>} : vector<8x128xf32>, vector<128x256xf32>, vector<8x256xf32> -> vector<8x256xf32>
    %23 = arith.addf %20, %22 : vector<8x256xf32>
    %c0_23 = arith.constant 0 : index
    %c0_24 = arith.constant 0 : index
    %24 = vector.load %arg10[%c0_23, %c0_24] : memref<1x256xf32, #tpu.memory_space<vmem>>, vector<1x256xf32>
    %25 = vector.broadcast %24 : vector<1x256xf32> to vector<8x256xf32>
    %26 = arith.addf %23, %25 : vector<8x256xf32>
    %c0_25 = arith.constant 0 : index
    %c0_26 = arith.constant 0 : index
    %27 = vector.load %arg11[%c0_25, %c0_26] : memref<8x256xf32, #tpu.memory_space<vmem>>, vector<8x256xf32>
    tpu.vector_store %arg11[%c0_25, %c0_26], %26 {strides = array<i32>} : memref<8x256xf32, #tpu.memory_space<vmem>>, vector<8x256xf32>,
    return
  }
  func.func @transform_0(%arg0: i32) -> (i32, i32) {
    %c0_i32 = arith.constant 0 : i32
    %c0_i32_0 = arith.constant 0 : i32
    return %arg0, %c0_i32 : i32, i32
  }
  func.func @transform_1(%arg0: i32) -> (i32, i32) {
    %c0_i32 = arith.constant 0 : i32
    %c0_i32_0 = arith.constant 0 : i32
    return %arg0, %c0_i32 : i32, i32
  }
  func.func @transform_2(%arg0: i32) -> (i32, i32) {
    %c0_i32 = arith.constant 0 : i32
    %c0_i32_0 = arith.constant 0 : i32
    %c0_i32_1 = arith.constant 0 : i32
    return %c0_i32, %c0_i32_0 : i32, i32
  }
  func.func @transform_3(%arg0: i32) -> (i32, i32) {
    %c0_i32 = arith.constant 0 : i32
    %c0_i32_0 = arith.constant 0 : i32
    %c0_i32_1 = arith.constant 0 : i32
    return %c0_i32, %c0_i32_0 : i32, i32
  }
  func.func @transform_4(%arg0: i32) -> (i32, i32) {
    %c0_i32 = arith.constant 0 : i32
    %c0_i32_0 = arith.constant 0 : i32
    %c0_i32_1 = arith.constant 0 : i32
    return %c0_i32, %c0_i32_0 : i32, i32
  }
  func.func @transform_5(%arg0: i32) -> (i32, i32) {
    %c0_i32 = arith.constant 0 : i32
    %c0_i32_0 = arith.constant 0 : i32
    %c0_i32_1 = arith.constant 0 : i32
    return %c0_i32, %c0_i32_0 : i32, i32
  }
  func.func @transform_6(%arg0: i32) -> (i32, i32) {
    %c0_i32 = arith.constant 0 : i32
    %c0_i32_0 = arith.constant 0 : i32
    %c0_i32_1 = arith.constant 0 : i32
    return %c0_i32, %c0_i32_0 : i32, i32
  }
  func.func @transform_7(%arg0: i32) -> (i32, i32) {
    %c0_i32 = arith.constant 0 : i32
    %c0_i32_0 = arith.constant 0 : i32
    %c0_i32_1 = arith.constant 0 : i32
    return %c0_i32, %c0_i32_0 : i32, i32
  }
  func.func @transform_8(%arg0: i32) -> (i32, i32) {
    %c0_i32 = arith.constant 0 : i32
    %c0_i32_0 = arith.constant 0 : i32
    %c0_i32_1 = arith.constant 0 : i32
    return %c0_i32, %c0_i32_0 : i32, i32
  }
  func.func @transform_9(%arg0: i32) -> (i32, i32) {
    %c0_i32 = arith.constant 0 : i32
    %c0_i32_0 = arith.constant 0 : i32
    %c0_i32_1 = arith.constant 0 : i32
    return %c0_i32, %c0_i32_0 : i32, i32
  }
  func.func @transform_10(%arg0: i32) -> (i32, i32) {
    %c0_i32 = arith.constant 0 : i32
    %c0_i32_0 = arith.constant 0 : i32
    return %arg0, %c0_i32 : i32, i32
  }
}

</mosaic_0001>

<bundles_post_ra>
// kernel: made_logits_pallas.1
= control target key start
LH: loop header
LB: loop body
LE: loop exit
PB: predicated region body
PF: predicated region fallthrough
CT: control target
= control target key end

     0   :  { %s2189_s0 = inlined_call_operand.vmem [shape: f32[16,256], index: 0, kind: input, shape index: {}]   ;;  %s2190_s1 = inlined_call_operand.vmem [shape: f32[16,128], index: 1, kind: input, shape index: {}]   ;;  %s2191_s2 = inlined_call_operand.hbm [shape: f32[256,256], index: 2, kind: input, shape index: {}]   ;;  %s2192_s3 = inlined_call_operand.hbm [shape: f32[128,256], index: 3, kind: input, shape index: {}]   ;;  %s2193_s4 = inlined_call_operand.vmem [shape: f32[1,256], index: 4, kind: input, shape index: {}]   ;;  %s2194_s5 = inlined_call_operand.hbm [shape: f32[256,256], index: 5, kind: input, shape index: {}]   ;;  %s2195_s6 = inlined_call_operand.vmem [shape: f32[1,256], index: 6, kind: input, shape index: {}]   ;;  %s2196_s7 = inlined_call_operand.hbm [shape: f32[256,256], index: 7, kind: input, shape index: {}]   ;;  %s2197_s8 = inlined_call_operand.hbm [shape: f32[128,256], index: 8, kind: input, shape index: {}]   ;;  %s2198_s9 = inlined_call_operand.vmem [shape: f32[1,256], index: 9, kind: input, shape index: {}]   ;;  %s2199_s10 = inlined_call_operand.hbm [shape: f32[16,256], index: 10, kind: output, shape index: {}]  }
   0x1   :  { %2209 = sst [smem:[#allocation22_spill]] %s2192_s3 }
   0x2   :  { %15 = vsyncpa [#allocation3], 0 }
   0x3   :  { %16 = vsyncpa [#allocation6], 0 }
   0x4   :  { %17 = vsyncpa [#allocation9], 0 }
   0x5   :  { %18 = vsyncpa [#allocation4], 0 }
   0x6   :  { %20 = vsyncpa [#allocation4 + $0x1], 0  ;;  %s1902_s13 = smov 0   ;;  %s1904_s14 = smov 0  }
   0x7   :  { %s1906_s15 = smov 0   ;;  %s1908_s16 = smov 0  }
   0x8 LB: > { %2210 = sst [smem:[#allocation16_spill]] %s1824_s13  ;;  %s1923_s17 = sadd.s32 4294967295, %s1836_s16   ;;  %s1836_s16 = sphi %s1908_s16, %s2234_s16   ;;  %s1832_s15 = sphi %s1906_s15, %s2236_s15   ;;  %s1828_s14 = sphi %s1904_s14, %s2238_s14   ;;  %s1824_s13 = sphi %s1902_s13, %s2237_s13  }
   0x9   : > { %2211 = sst [smem:[#allocation17_spill]] %s1832_s15  ;;  %s1244_s18 = sadd.s32 4294967294, %s1836_s16  }
   0xa   : > { %2212 = sst [smem:[#allocation18_spill]] %s1836_s16  ;;  %s1927_s19 = sadd.s32 1, %s1836_s16  }
   0xb   : > { %2213 = sst [smem:[#allocation19_spill]] %s1927_s19  ;;  %s253_s20 = sadd.s32 1, %s1832_s15 }
   0xc   : > { %s250_s21 = ssub.s32 %s1836_s16, %s1927_s19  ;;  %p263_p0 = scmp.ne.s32.totalorder %s1832_s15, %s1828_s14 }
   0xd   : > { %p251_p1 = scmp.eq.s32.totalorder %s250_s21, 0  ;;  %p264_p2 = scmp.eq.s32.totalorder %s1923_s17, 1 }
   0xe   : > { %p269_p3 = scmp.ne.s32.totalorder %s1828_s14, %s1824_s13  ;;  %p270_p4 = scmp.eq.s32.totalorder %s1244_s18, 1 }
   0xf   : > { %s1938_s22 = scalar_select %p251_p1, %s1832_s15, %s253_s20  }
  0x10   : > { %p1940_p5 = por %p264_p2, %p263_p0  ;;  %p1944_p6 = por %p270_p4, %p269_p3 }
  0x11   : > { %2214 = sst [smem:[#allocation20_spill]] %s1938_s22  ;;  %p1245_p7 = scmp.ge.s32.totalorder %s1836_s16, 1 }
  0x12   : > { %s2215_s23 = scalar_select %p1940_p5, 1, 0 }
  0x13   : > { %s2216_s24 = scalar_select %p1944_p6, 1, 0 }
  0x14   : > { %p277_p8 = scmp.lt.s32.totalorder %s1836_s16, 3  ;;  %p2201_p9 = scmp.eq.s32.totalorder %s1923_s17, 0 }
  0x15   : > { %2217 = sst [smem:[#allocation21_spill]] %s2216_s24  ;;  %s1838_s26 = smov [#allocation5]  }
  0x16   : > { %p1951_p10 = pnand %p1245_p7, %p277_p8  ;;  %s302_s27 = sshll.u32 %s1838_s26, 4  ;;  %s1957_s27 = int_to_ptr.vmem [resolvable:$true] %s302_s27 }
  0x17   : > { %s1839_s29 = smov [#allocation8]   ;;  %s1840_s11 = smov [#allocation2]  }
  0x18   : > { %s2218_s25 = scalar_select %p1951_p10, 1, 0 }
  0x19   : > { %p1551_p11 = pneg %p1951_p10  ;;  %s334_s30 = sshll.u32 %s1839_s29, 4  ;;  %s1965_s30 = int_to_ptr.vmem [resolvable:$true] %s334_s30 }
  0x1a   : > { %s1967_s12 = sshll.u32 %s1840_s11, 4  ;;  %s2220_s3 = sld [smem:[#allocation22_spill]]  ;;  %s290_s12 = int_to_ptr.vmem [resolvable:$true] %s1967_s12 }
  0x1b   : > { %p1961_p12 = pnand %p2201_p9, %p1551_p11 }
  0x1d   : > { %p1977_p0 = pneg %p1961_p12 }
  0x20   : > { %s1622_s21 = scalar_lea.hbm %s2220_s3, 4096 }
  0x21   : > { %p1623_p13 = scmp.ne.s32.totalorder %s2220_s3, %s1622_s21  ;;  %p1629_p3 = scmp.lt.u32.totalorder %s1622_s21, %s2220_s3 }
  0x23   : > { %p1625_p1 = pnand %p1977_p0, %p1623_p13 }
  0x25   : > { %p1626_p2 = pneg %p1625_p1 }
  0x27   : > { %p1631_p4 = pnand %p1629_p3, %p1626_p2 }
  0x29   : > { %1634 = shalt.err (!%p1631_p4)
}
  0x2a   : > { %s1635_s22 = scalar_lea.vmem %s1957_s27, 4096  ;;  %p1643_p9 = scmp.lt.s32.totalorder %s1957_s27, %s1957_s27 }
  0x2b   : > { %p1636_p7 = scmp.ne.s32.totalorder %s1957_s27, %s1635_s22  ;;  %p1644_p6 = scmp.lt.s32.totalorder %s1635_s22, %s1635_s22 }
  0x2d   : > { %p1638_p8 = pnand %p1636_p7, %p1977_p0  ;;  %p1645_p13 = por %p1644_p6, %p1643_p9 }
  0x2f   : > { %p1639_p11 = pneg %p1638_p8 }
  0x31   : > { %p1646_p1 = pnand %p1645_p13, %p1639_p11 }
  0x33   : > { %1649 = shalt.err (!%p1646_p1)
}
  0x34   : > { %s1841_s18 = smov 256   ;;  %s1842_s20 = smov 16  }
  0x35   : > { %1557 = dma.hbm_to_vmem [thread:$0]  (!%p1961_p12), %s2220_s3, 4096, %s1957_s27, [#allocation6], %s1841_s18, %s1841_s18, %s1842_s20  }
  0x36   : > { %s1650_s22 = scalar_lea.hbm %s2196_s7, 8192 }
  0x37   : > { %p1651_p6 = scmp.ne.s32.totalorder %s2196_s7, %s1650_s22  ;;  %p1657_p3 = scmp.lt.u32.totalorder %s1650_s22, %s2196_s7 }
  0x39   : > { %p1653_p9 = pnand %p1651_p6, %p1977_p0 }
  0x3b   : > { %p1654_p2 = pneg %p1653_p9 }
  0x3d   : > { %p1659_p4 = pnand %p1657_p3, %p1654_p2 }
  0x3f   : > { %1662 = shalt.err (!%p1659_p4)
}
  0x40   : > { %s1663_s27 = scalar_lea.vmem %s1965_s30, 8192  ;;  %p1671_p13 = scmp.lt.s32.totalorder %s1965_s30, %s1965_s30 }
  0x41   : > { %p1664_p7 = scmp.ne.s32.totalorder %s1965_s30, %s1663_s27  ;;  %p1672_p1 = scmp.lt.s32.totalorder %s1663_s27, %s1663_s27 }
  0x43   : > { %p1666_p8 = pnand %p1664_p7, %p1977_p0  ;;  %p1673_p6 = por %p1672_p1, %p1671_p13 }
  0x45   : > { %p1667_p11 = pneg %p1666_p8 }
  0x47   : > { %p1674_p9 = pnand %p1673_p6, %p1667_p11 }
  0x49   : > { %1677 = shalt.err (!%p1674_p9)
}
  0x4a   : > { %1563 = dma.hbm_to_vmem [thread:$0]  (!%p1961_p12), %s2196_s7, 8192, %s1965_s30, [#allocation9], %s1841_s18, %s1841_s18, %s1842_s20  }
  0x4b   : > { %s1678_s21 = scalar_lea.hbm %s2191_s2, 8192 }
  0x4c   : > { %p1679_p2 = scmp.ne.s32.totalorder %s2191_s2, %s1678_s21  ;;  %p1685_p7 = scmp.lt.u32.totalorder %s1678_s21, %s2191_s2 }
  0x4e   : > { %p1681_p3 = pnand %p1679_p2, %p1977_p0 }
  0x50   : > { %p1682_p4 = pneg %p1681_p3 }
  0x52   : > { %p1687_p8 = pnand %p1685_p7, %p1682_p4 }
  0x54   : > { %1690 = shalt.err (!%p1687_p8)
}
  0x55   : > { %s1691_s27 = scalar_lea.vmem %s290_s12, 8192  ;;  %p1699_p6 = scmp.lt.s32.totalorder %s290_s12, %s290_s12 }
  0x56   : > { %p1692_p11 = scmp.ne.s32.totalorder %s290_s12, %s1691_s27  ;;  %p1700_p9 = scmp.lt.s32.totalorder %s1691_s27, %s1691_s27 }
  0x58   : > { %p1694_p13 = pnand %p1692_p11, %p1977_p0  ;;  %p1701_p5 = por %p1700_p9, %p1699_p6 }
  0x5a   : > { %p1695_p1 = pneg %p1694_p13 }
  0x5c   : > { %p1702_p10 = pnand %p1701_p5, %p1695_p1 }
  0x5e   : > { %1705 = shalt.err (!%p1702_p10)
}
  0x5f   : > { %1554 = dma.hbm_to_vmem [thread:$0]  (!%p1961_p12), %s2191_s2, 8192, %s290_s12, [#allocation3], %s1841_s18, %s1841_s18, %s1842_s20  }
  0x60   : > { %s1843_s16 = smov [#allocation7]   ;;  %s1844_s24 = smov [#allocation10]  }
  0x61   : > { %s318_s19 = sshll.u32 %s1843_s16, 4  ;;  %s347_s21 = sshll.u32 %s1844_s24, 4  ;;  %s319_s19 = int_to_ptr.vmem [resolvable:$true] %s318_s19  ;;  %s348_s21 = int_to_ptr.vmem [resolvable:$true] %s347_s21 }
  0x62   : > { %s1706_s11 = scalar_lea.hbm %s2194_s5, 8192 }
  0x63   : > { %p1707_p5 = scmp.ne.s32.totalorder %s2194_s5, %s1706_s11  ;;  %p1713_p3 = scmp.lt.u32.totalorder %s1706_s11, %s2194_s5 }
  0x65   : > { %p1709_p10 = pnand %p1707_p5, %p1977_p0 }
  0x67   : > { %p1710_p2 = pneg %p1709_p10 }
  0x69   : > { %p1715_p4 = pnand %p1713_p3, %p1710_p2 }
  0x6b   : > { %1718 = shalt.err (!%p1715_p4)
}
  0x6c   : > { %s1719_s12 = scalar_lea.vmem %s319_s19, 8192  ;;  %p1727_p13 = scmp.lt.s32.totalorder %s319_s19, %s319_s19 }
  0x6d   : > { %p1720_p7 = scmp.ne.s32.totalorder %s319_s19, %s1719_s12  ;;  %p1728_p1 = scmp.lt.s32.totalorder %s1719_s12, %s1719_s12 }
  0x6f   : > { %p1722_p8 = pnand %p1720_p7, %p1977_p0  ;;  %p1729_p6 = por %p1728_p1, %p1727_p13 }
  0x71   : > { %p1723_p11 = pneg %p1722_p8 }
  0x73   : > { %p1730_p9 = pnand %p1729_p6, %p1723_p11 }
  0x75   : > { %1733 = shalt.err (!%p1730_p9)
}
  0x76   : > { %1560 = dma.hbm_to_vmem [thread:$0]  (!%p1961_p12), %s2194_s5, 8192, %s319_s19, [#allocation6], %s1841_s18, %s1841_s18, %s1842_s20  }
  0x77   : > { %s1734_s26 = scalar_lea.hbm %s2197_s8, 4096 }
  0x78   : > { %p1735_p5 = scmp.ne.s32.totalorder %s2197_s8, %s1734_s26  ;;  %p1741_p3 = scmp.lt.u32.totalorder %s1734_s26, %s2197_s8 }
  0x7a   : > { %p1737_p10 = pnand %p1735_p5, %p1977_p0 }
  0x7c   : > { %p1738_p2 = pneg %p1737_p10 }
  0x7e   : > { %p1743_p4 = pnand %p1741_p3, %p1738_p2 }
  0x80   : > { %1746 = shalt.err (!%p1743_p4)
}
  0x81   : > { %s1747_s30 = scalar_lea.vmem %s348_s21, 4096  ;;  %p1755_p13 = scmp.lt.s32.totalorder %s348_s21, %s348_s21 }
  0x82   : > { %p1748_p7 = scmp.ne.s32.totalorder %s348_s21, %s1747_s30  ;;  %p1756_p1 = scmp.lt.s32.totalorder %s1747_s30, %s1747_s30 }
  0x84   : > { %p1750_p8 = pnand %p1748_p7, %p1977_p0  ;;  %p1757_p6 = por %p1756_p1, %p1755_p13 }
  0x86   : > { %p1751_p11 = pneg %p1750_p8 }
  0x88   : > { %p1758_p9 = pnand %p1757_p6, %p1751_p11 }
  0x8a   : > { %1761 = shalt.err (!%p1758_p9)
}
  0x8b   : > { %1566 = dma.hbm_to_vmem [thread:$0]  (!%p1961_p12), %s2197_s8, 4096, %s348_s21, [#allocation9], %s1841_s18, %s1841_s18, %s1842_s20  }
  0x8c   : > { %p2222_p5 = scmp.ne.s32.totalorder %s2218_s25, 0 }
  0x8d   : > { %p2223_p0 = scmp.eq.s32.totalorder (!%p2222_p5), %s1923_s17, 0 }
  0x8e   : > { %381 = sbr.rel (%p2222_p5) target bundleno = 922 (0x39a), region = 60 }
  0x95   : > { %1807 = dma.done.wait (%p2223_p0), [#allocation3], 8192   ;;  %p2224_p10 = pmov %p2223_p0 }
  0x96   : > { %p2225_p2 = pmov %p2223_p0 }
  0x97   : > { %1809 = vsyncadd (%p2224_p10), [#allocation3], 4294959104 }
  0x98   : > { %1811 = dma.done.wait (%p2225_p2), [#allocation6], 12288   ;;  %p2226_p3 = pmov %p2223_p0 }
  0x99   : > { %p2227_p4 = pmov %p2223_p0 }
  0x9a   : > { %1813 = vsyncadd (%p2226_p3), [#allocation6], 4294955008 }
  0x9b   : > { %1815 = dma.done.wait (%p2227_p4), [#allocation9], 12288   ;;  %p2228_p12 = pmov %p2223_p0 }
  0x9c   : > { %v1845_v0 = vmov 0.0   ;;  %v516_v1 = vld [vmem:[#allocation5 + $0x8] sm:$0xff]  ;;  %v518_v2 = vld [vmem:[#allocation5 + $0x18] sm:$0xff]  ;;  %v515_v3 = vld [vmem:[#allocation5] sm:$0xff]  ;;  %p439_p7 = scmp.lt.s32.totalorder %s1923_s17, 1  ;;  %s436_s22 = sand.u32 1, %s1828_s14  }
  0x9d   : > { %1817 = vsyncadd (%p2228_p12), [#allocation9], 4294955008  ;;  %611 = vmatprep.mubr.f32.mxu0 %v1845_v0  ;;  %v1269_v4 = vpack.c.bf16 %v518_v2, %v516_v1  ;;  %v517_v5 = vld [vmem:[#allocation5 + $0x10] sm:$0xff]  ;;  %v520_v6 = vld [vmem:[#allocation5 + $0x28] sm:$0xff]  ;;  %s1258_s27 = sshll.u32 %s436_s22, 4  ;;  %s1268_s12 = sshll.u32 %s1923_s17, 8 }
  0x9e   : > { %v522_v7 = vld [vmem:[#allocation5 + $0x38] sm:$0xff]  ;;  %v1271_v8 = vpack.c.bf16 %v517_v5, %v515_v3  ;;  %v519_v10 = vld [vmem:[#allocation5 + $0x20] sm:$0xff]  ;;  %v521_v11 = vld [vmem:[#allocation5 + $0x30] sm:$0xff]  ;;  %s440_s15 = scalar_select %p439_p7, %s1923_s17, 1 }
  0x9f   : > { %v1273_v9 = vpack.c.bf16 %v522_v7, %v520_v6  ;;  %v524_v12 = vld [vmem:[#allocation5 + $0x48] sm:$0xff]  ;;  %1270 = vmatprep.subr.bf16.mxu0 %v1269_v4  ;;  %v526_v13 = vld [vmem:[#allocation5 + $0x58] sm:$0xff]  ;;  %v1275_v14 = vpack.c.bf16 %v521_v11, %v519_v10  ;;  %v523_v16 = vld [vmem:[#allocation5 + $0x40] sm:$0xff]  ;;  %s2147_s20 = scalar_lea.hbm %s2199_s10, %s1268_s12  ;;  %p2229_p11 = scmp.ne.s32.totalorder %s2215_s23, 0 }
  0xa0   : > { %1272 = vmatpush1.bf16.msra.mxu0 %v1271_v8  ;;  %v1277_v15 = vpack.c.bf16 %v526_v13, %v524_v12  ;;  %v525_v17 = vld [vmem:[#allocation5 + $0x50] sm:$0xff]  ;;  %v528_v18 = vld [vmem:[#allocation5 + $0x68] sm:$0xff]  ;;  %v530_v19 = vld [vmem:[#allocation5 + $0x78] sm:$0xff]  ;;  %s1261_s25 = sshll.u32 %s440_s15, 3  ;;  %s1267_s28 = sshll.u32 %s440_s15, 4 }
  0xa1   : > { %1274 = vmatprep.subr.bf16.mxu0 %v1273_v9  ;;  %v1279_v20 = vpack.c.bf16 %v525_v17, %v523_v16  ;;  %v1281_v21 = vpack.c.bf16 %v530_v19, %v528_v18  ;;  %v527_v22 = vld [vmem:[#allocation5 + $0x60] sm:$0xff]  ;;  %v529_v23 = vld [vmem:[#allocation5 + $0x70] sm:$0xff]  ;;  %v532_v24 = vld [vmem:[#allocation5 + $0x88] sm:$0xff]  ;;  %s447_s21 = scalar_lea.vmem %s2190_s1, %s1261_s25  ;;  %s2114_s16 = scalar_lea.vmem %s2189_s0, %s1267_s28 }
  0xa2   : > { %v534_v25 = vld [vmem:[#allocation5 + $0x98] sm:$0xff]  ;;  %v1283_v26 = vpack.c.bf16 %v529_v23, %v527_v22  ;;  %v531_v28 = vld [vmem:[#allocation5 + $0x80] sm:$0xff]  ;;  %v533_v29 = vld [vmem:[#allocation5 + $0x90] sm:$0xff]  ;;  %s438_s15 = scalar_lea.vmem [#allocation11], %s1258_s27  ;;  %s1846_s17 = smov [#allocation11]  }
  0xa3   : > { %v1285_v27 = vpack.c.bf16 %v534_v25, %v532_v24  ;;  %v536_v30 = vld [vmem:[#allocation5 + $0xa8] sm:$0xff]  ;;  %v538_v31 = vld [vmem:[#allocation5 + $0xb8] sm:$0xff]  ;;  %v1287_v32 = vpack.c.bf16 %v533_v29, %v531_v28  ;;  %v535_v34 = vld [vmem:[#allocation5 + $0xa0] sm:$0xff]  ;;  %s1123_s25 = sshll.u32 %s438_s15, 4  ;;  %s1766_s13 = sshll.u32 %s1846_s17, 4  ;;  %s2149_s25 = int_to_ptr.vmem [resolvable:$true] %s1123_s25  ;;  %s1767_s13 = int_to_ptr.vmem [resolvable:$false] %s1766_s13 }
  0xa4   : > { %1276 = vmatpush1.bf16.msra.mxu0 %v1275_v14  ;;  %v1289_v33 = vpack.c.bf16 %v538_v31, %v536_v30  ;;  %v537_v35 = vld [vmem:[#allocation5 + $0xb0] sm:$0xff]  ;;  %v540_v36 = vld [vmem:[#allocation5 + $0xc8] sm:$0xff]  ;;  %v542_v37 = vld [vmem:[#allocation5 + $0xd8] sm:$0xff]  ;;  %s1762_s3 = scalar_lea.vmem %s2149_s25, 256  ;;  %p1769_p6 = scmp.lt.s32.totalorder %s2149_s25, %s1767_s13 }
  0xa5   : > { %1278 = vmatprep.subr.bf16.mxu0 %v1277_v15  ;;  %v1291_v38 = vpack.c.bf16 %v537_v35, %v535_v34  ;;  %v1293_v39 = vpack.c.bf16 %v542_v37, %v540_v36  ;;  %v539_v40 = vld [vmem:[#allocation5 + $0xc0] sm:$0xff]  ;;  %v541_v41 = vld [vmem:[#allocation5 + $0xd0] sm:$0xff]  ;;  %v544_v42 = vld [vmem:[#allocation5 + $0xe8] sm:$0xff]  ;;  %p1763_p8 = scmp.ne.s32.totalorder %s2149_s25, %s1762_s3 }
  0xa6   : > { %v546_v43 = vld [vmem:[#allocation5 + $0xf8] sm:$0xff]  ;;  %v1295_v44 = vpack.c.bf16 %v541_v41, %v539_v40  ;;  %v543_v46 = vld [vmem:[#allocation5 + $0xe0] sm:$0xff]  ;;  %v545_v47 = vld [vmem:[#allocation5 + $0xf0] sm:$0xff] }
  0xa7   : > { %v1297_v45 = vpack.c.bf16 %v546_v43, %v544_v42  ;;  %v452_v48 = vld [vmem:[#allocation2 + $0x8] sm:$0xff]  ;;  %v454_v49 = vld [vmem:[#allocation2 + $0x18] sm:$0xff]  ;;  %v1299_v50 = vpack.c.bf16 %v545_v47, %v543_v46  ;;  %v451_v52 = vld [vmem:[#allocation2] sm:$0xff]  ;;  %p1764_p13 = pnand %p1763_p8, %p2229_p11 }
  0xa8   : > { %1280 = vmatpush1.bf16.msra.mxu0 %v1279_v20  ;;  %v1301_v51 = vpack.c.bf16 %v454_v49, %v452_v48  ;;  %v453_v53 = vld [vmem:[#allocation2 + $0x10] sm:$0xff]  ;;  %v456_v54 = vld [vmem:[#allocation2 + $0x28] sm:$0xff]  ;;  %v458_v55 = vld [vmem:[#allocation2 + $0x38] sm:$0xff] }
  0xa9   : > { %1282 = vmatprep.subr.bf16.mxu0 %v1281_v21  ;;  %v2116_v56 = vld [vmem:[%s447_s21] sm:$0xff]  ;;  %v457_v58 = vld [vmem:[#allocation2 + $0x30] sm:$0xff]  ;;  %v1303_v59 = vpack.c.bf16 %v453_v53, %v451_v52  ;;  %v460_v60 = vld [vmem:[#allocation2 + $0x48] sm:$0xff]  ;;  %v1305_v63 = vpack.c.bf16 %v458_v55, %v456_v54  ;;  %s1109_s21 = scalar_lea.sflag [#allocation4], %s436_s22  ;;  %p1765_p1 = pneg %p1764_p13 }
  0xaa   : > { %v455_v57 = vld [vmem:[#allocation2 + $0x20] sm:$0xff]  ;;  %v462_v61 = vld [vmem:[#allocation2 + $0x58] sm:$0xff]  ;;  %v449_v62 = vld [vmem:[%s2114_s16 + $0x8] sm:$0xff] }
  0xab   : > { %v706_v1 = vld [vmem:[#allocation7 + $0x8] sm:$0xff]  ;;  %v708_v2 = vld [vmem:[#allocation7 + $0x18] sm:$0xff]  ;;  %v705_v3 = vld [vmem:[#allocation7] sm:$0xff]  ;;  %v1307_v12 = vpack.c.bf16 %v457_v58, %v455_v57  ;;  %v1309_v15 = vpack.c.bf16 %v462_v61, %v460_v60 }
  0xac   : > { %1284 = vmatpush1.bf16.msra.mxu0 %v1283_v26  ;;  %v1365_v4 = vpack.c.bf16 %v708_v2, %v706_v1  ;;  %v707_v5 = vld [vmem:[#allocation7 + $0x10] sm:$0xff]  ;;  %v710_v6 = vld [vmem:[#allocation7 + $0x28] sm:$0xff]  ;;  %v712_v7 = vld [vmem:[#allocation7 + $0x38] sm:$0xff] }
  0xad   : > { %1286 = vmatprep.subr.bf16.mxu0 %v1285_v27  ;;  %v1367_v8 = vpack.c.bf16 %v707_v5, %v705_v3  ;;  %v1369_v9 = vpack.c.bf16 %v712_v7, %v710_v6  ;;  %v709_v10 = vld [vmem:[#allocation7 + $0x20] sm:$0xff]  ;;  %v711_v11 = vld [vmem:[#allocation7 + $0x30] sm:$0xff]  ;;  %v714_v13 = vld [vmem:[#allocation7 + $0x48] sm:$0xff] }
  0xae   : > { %v716_v14 = vld [vmem:[#allocation7 + $0x58] sm:$0xff]  ;;  %v459_v16 = vld [vmem:[#allocation2 + $0x40] sm:$0xff]  ;;  %v461_v17 = vld [vmem:[#allocation2 + $0x50] sm:$0xff]  ;;  %1366 = vmatprep.subr.bf16.mxu1 %v1365_v4  ;;  %v1371_v20 = vpack.c.bf16 %v711_v11, %v709_v10 }
  0xaf   : > { %v464_v18 = vld [vmem:[#allocation2 + $0x68] sm:$0xff]  ;;  %v466_v19 = vld [vmem:[#allocation2 + $0x78] sm:$0xff]  ;;  %1368 = vmatpush1.bf16.msra.mxu1 %v1367_v8  ;;  %v1373_v21 = vpack.c.bf16 %v716_v14, %v714_v13  ;;  %v713_v22 = vld [vmem:[#allocation7 + $0x40] sm:$0xff]  ;;  %v1311_v24 = vpack.c.bf16 %v461_v17, %v459_v16 }
  0xb0   : > { %1288 = vmatpush1.bf16.msra.mxu0 %v1287_v32  ;;  %1370 = vmatprep.subr.bf16.mxu1 %v1369_v9  ;;  %v715_v23 = vld [vmem:[#allocation7 + $0x50] sm:$0xff]  ;;  %v718_v25 = vld [vmem:[#allocation7 + $0x68] sm:$0xff]  ;;  %v720_v26 = vld [vmem:[#allocation7 + $0x78] sm:$0xff]  ;;  %v1313_v27 = vpack.c.bf16 %v466_v19, %v464_v18 }
  0xb1   : > { %1290 = vmatprep.subr.bf16.mxu0 %v1289_v33  ;;  %v463_v28 = vld [vmem:[#allocation2 + $0x60] sm:$0xff]  ;;  %v465_v29 = vld [vmem:[#allocation2 + $0x70] sm:$0xff]  ;;  %v468_v30 = vld [vmem:[#allocation2 + $0x88] sm:$0xff]  ;;  %v1375_v32 = vpack.c.bf16 %v715_v23, %v713_v22  ;;  %v1377_v33 = vpack.c.bf16 %v720_v26, %v718_v25 }
  0xb2   : > { %v470_v31 = vld [vmem:[#allocation2 + $0x98] sm:$0xff]  ;;  %v717_v34 = vld [vmem:[#allocation7 + $0x60] sm:$0xff]  ;;  %v719_v35 = vld [vmem:[#allocation7 + $0x70] sm:$0xff]  ;;  %v1315_v36 = vpack.c.bf16 %v465_v29, %v463_v28 }
  0xb3   : > { %1372 = vmatpush1.bf16.msra.mxu1 %v1371_v20  ;;  %v722_v37 = vld [vmem:[#allocation7 + $0x88] sm:$0xff]  ;;  %v467_v40 = vld [vmem:[#allocation2 + $0x80] sm:$0xff]  ;;  %v469_v41 = vld [vmem:[#allocation2 + $0x90] sm:$0xff] }
  0xb4   : > { %1292 = vmatpush1.bf16.msra.mxu0 %v1291_v38  ;;  %1374 = vmatprep.subr.bf16.mxu1 %v1373_v21  ;;  %v724_v38 = vld [vmem:[#allocation7 + $0x98] sm:$0xff]  ;;  %v472_v42 = vld [vmem:[#allocation2 + $0xa8] sm:$0xff]  ;;  %v721_v46 = vld [vmem:[#allocation7 + $0x80] sm:$0xff]  ;;  %v1319_v48 = vpack.c.bf16 %v469_v41, %v467_v40 }
  0xb5   : > { %1294 = vmatprep.subr.bf16.mxu0 %v1293_v39  ;;  %v1317_v39 = vpack.c.bf16 %v470_v31, %v468_v30  ;;  %v474_v43 = vld [vmem:[#allocation2 + $0xb8] sm:$0xff]  ;;  %v723_v47 = vld [vmem:[#allocation7 + $0x90] sm:$0xff]  ;;  %v726_v49 = vld [vmem:[#allocation7 + $0xa8] sm:$0xff] }
  0xb6   : > { %v471_v52 = vld [vmem:[#allocation2 + $0xa0] sm:$0xff]  ;;  %v473_v53 = vld [vmem:[#allocation2 + $0xb0] sm:$0xff]  ;;  %v476_v54 = vld [vmem:[#allocation2 + $0xc8] sm:$0xff]  ;;  %v1383_v57 = vpack.c.bf16 %v723_v47, %v721_v46 }
  0xb7   : > { %1376 = vmatpush1.bf16.msra.mxu1 %v1375_v32  ;;  %v478_v55 = vld [vmem:[#allocation2 + $0xd8] sm:$0xff]  ;;  %v727_v60 = vld [vmem:[#allocation7 + $0xb0] sm:$0xff]  ;;  %v1323_v61 = vpack.c.bf16 %v473_v53, %v471_v52  ;;  %v475_v2 = vld [vmem:[#allocation2 + $0xc0] sm:$0xff] }
  0xb8   : > { %1296 = vmatpush1.bf16.msra.mxu0 %v1295_v44  ;;  %v1379_v44 = vpack.c.bf16 %v719_v35, %v717_v34  ;;  %1378 = vmatprep.subr.bf16.mxu1 %v1377_v33  ;;  %v1325_v1 = vpack.c.bf16 %v478_v55, %v476_v54  ;;  %v477_v3 = vld [vmem:[#allocation2 + $0xd0] sm:$0xff]  ;;  %v480_v4 = vld [vmem:[#allocation2 + $0xe8] sm:$0xff]  ;;  %v482_v5 = vld [vmem:[#allocation2 + $0xf8] sm:$0xff] }
  0xb9   : > { %1298 = vmatprep.subr.bf16.mxu0 %v1297_v45  ;;  %v1381_v45 = vpack.c.bf16 %v724_v38, %v722_v37  ;;  %v729_v8 = vld [vmem:[#allocation7 + $0xc0] sm:$0xff]  ;;  %v731_v9 = vld [vmem:[#allocation7 + $0xd0] sm:$0xff]  ;;  %v1327_v10 = vpack.c.bf16 %v477_v3, %v475_v2  ;;  %v734_v11 = vld [vmem:[#allocation7 + $0xe8] sm:$0xff]  ;;  %v1329_v13 = vpack.c.bf16 %v482_v5, %v480_v4 }
  0xba   : > { %v479_v14 = vld [vmem:[#allocation2 + $0xe0] sm:$0xff]  ;;  %v484_v16 = vld [vmem:[#allocation2 + $0x108] sm:$0xff]  ;;  %v486_v17 = vld [vmem:[#allocation2 + $0x118] sm:$0xff]  ;;  %v1391_v18 = vpack.c.bf16 %v731_v9, %v729_v8 }
  0xbb   : > { %1380 = vmatpush1.bf16.msra.mxu1 %v1379_v44  ;;  %v733_v20 = vld [vmem:[#allocation7 + $0xe0] sm:$0xff]  ;;  %v735_v21 = vld [vmem:[#allocation7 + $0xf0] sm:$0xff]  ;;  %v738_v23 = vld [vmem:[#allocation7 + $0x108] sm:$0xff]  ;;  %v1333_v25 = vpack.c.bf16 %v486_v17, %v484_v16 }
  0xbc   : > { %1300 = vmatpush1.bf16.msra.mxu0 %v1299_v50  ;;  %v728_v50 = vld [vmem:[#allocation7 + $0xb8] sm:$0xff]  ;;  %1382 = vmatprep.subr.bf16.mxu1 %v1381_v45  ;;  %v483_v26 = vld [vmem:[#allocation2 + $0x100] sm:$0xff]  ;;  %v488_v28 = vld [vmem:[#allocation2 + $0x128] sm:$0xff]  ;;  %v1395_v30 = vpack.c.bf16 %v735_v21, %v733_v20 }
  0xbd   : > { %1302 = vmatprep.subr.bf16.mxu0 %v1301_v51  ;;  %v1321_v51 = vpack.c.bf16 %v474_v43, %v472_v42  ;;  %v1385_v58 = vpack.c.bf16 %v728_v50, %v726_v49  ;;  %v490_v29 = vld [vmem:[#allocation2 + $0x138] sm:$0xff]  ;;  %v737_v32 = vld [vmem:[#allocation7 + $0x100] sm:$0xff]  ;;  %v739_v33 = vld [vmem:[#allocation7 + $0x110] sm:$0xff] }
  0xbe   : > { %v742_v35 = vld [vmem:[#allocation7 + $0x128] sm:$0xff]  ;;  %v1337_v37 = vpack.c.bf16 %v490_v29, %v488_v28  ;;  %v487_v38 = vld [vmem:[#allocation2 + $0x120] sm:$0xff]  ;;  %v494_v41 = vld [vmem:[#allocation2 + $0x158] sm:$0xff]  ;;  %v1399_v42 = vpack.c.bf16 %v739_v33, %v737_v32 }
  0xbf   : > { %612 = vmatmul.mubr.f32.vlgmr.msra.gmra.mrb[0].mxu0 %v2116_v56  ;;  %1384 = vmatpush1.bf16.msra.mxu1 %v1383_v57  ;;  %v492_v40 = vld [vmem:[#allocation2 + $0x148] sm:$0xff]  ;;  %v741_v44 = vld [vmem:[#allocation7 + $0x120] sm:$0xff]  ;;  %v743_v45 = vld [vmem:[#allocation7 + $0x130] sm:$0xff] }
  0xc0   : > { %1304 = vmatpush1.bf16.msra.mxu0 %v1303_v59  ;;  %682 = vmatprep.mubr.f32.mxu0 %v449_v62  ;;  %v725_v59 = vld [vmem:[#allocation7 + $0xa0] sm:$0xff]  ;;  %v730_v62 = vld [vmem:[#allocation7 + $0xc8] sm:$0xff]  ;;  %v1341_v49 = vpack.c.bf16 %v494_v41, %v492_v40  ;;  %v498_v53 = vld [vmem:[#allocation2 + $0x178] sm:$0xff]  ;;  %v1403_v54 = vpack.c.bf16 %v743_v45, %v741_v44 }
  0xc1   : > { %1306 = vmatprep.subr.bf16.mxu0 %v1305_v63  ;;  %v732_v63 = vld [vmem:[#allocation7 + $0xd8] sm:$0xff]  ;;  %v1387_v6 = vpack.c.bf16 %v727_v60, %v725_v59  ;;  %1386 = vmatprep.subr.bf16.mxu1 %v1385_v58  ;;  %v746_v47 = vld [vmem:[#allocation7 + $0x148] sm:$0xff]  ;;  %v491_v50 = vld [vmem:[#allocation2 + $0x140] sm:$0xff] }
  0xc2   : > { %v1389_v7 = vpack.c.bf16 %v732_v63, %v730_v62  ;;  %v496_v52 = vld [vmem:[#allocation2 + $0x168] sm:$0xff]  ;;  %v745_v57 = vld [vmem:[#allocation7 + $0x140] sm:$0xff]  ;;  %v747_v58 = vld [vmem:[#allocation7 + $0x150] sm:$0xff] }
  0xc3   : > { %1388 = vmatpush1.bf16.msra.mxu1 %v1387_v6  ;;  %v750_v60 = vld [vmem:[#allocation7 + $0x168] sm:$0xff]  ;;  %v1345_v62 = vpack.c.bf16 %v498_v53, %v496_v52  ;;  %v495_v63 = vld [vmem:[#allocation2 + $0x160] sm:$0xff]  ;;  %v502_v3 = vld [vmem:[#allocation2 + $0x198] sm:$0xff]  ;;  %v1407_v4 = vpack.c.bf16 %v747_v58, %v745_v57 }
  0xc4   : > { %1308 = vmatpush1.bf16.msra.mxu0 %v1307_v12  ;;  %v736_v12 = vld [vmem:[#allocation7 + $0xf8] sm:$0xff]  ;;  %1390 = vmatprep.subr.bf16.mxu1 %v1389_v7  ;;  %v500_v2 = vld [vmem:[#allocation2 + $0x188] sm:$0xff]  ;;  %v749_v6 = vld [vmem:[#allocation7 + $0x160] sm:$0xff] }
  0xc5   : > { %1310 = vmatprep.subr.bf16.mxu0 %v1309_v15  ;;  %v481_v15 = vld [vmem:[#allocation2 + $0xf0] sm:$0xff]  ;;  %v1393_v19 = vpack.c.bf16 %v736_v12, %v734_v11  ;;  %v754_v9 = vld [vmem:[#allocation7 + $0x188] sm:$0xff]  ;;  %v1349_v11 = vpack.c.bf16 %v502_v3, %v500_v2  ;;  %v499_v12 = vld [vmem:[#allocation2 + $0x180] sm:$0xff] }
  0xc6   : > { %v1331_v22 = vpack.c.bf16 %v481_v15, %v479_v14  ;;  %v751_v7 = vld [vmem:[#allocation7 + $0x170] sm:$0xff]  ;;  %v504_v14 = vld [vmem:[#allocation2 + $0x1a8] sm:$0xff]  ;;  %v506_v15 = vld [vmem:[#allocation2 + $0x1b8] sm:$0xff] }
  0xc7   : > { %1392 = vmatpush1.bf16.msra.mxu1 %v1391_v18  ;;  %v1411_v16 = vpack.c.bf16 %v751_v7, %v749_v6  ;;  %v753_v18 = vld [vmem:[#allocation7 + $0x180] sm:$0xff]  ;;  %v758_v21 = vld [vmem:[#allocation7 + $0x1a8] sm:$0xff]  ;;  %v513_v45 = vld [vmem:[#allocation2 + $0x1f0] sm:$0xff] }
  0xc8   : > { %1312 = vmatpush1.bf16.msra.mxu0 %v1311_v24  ;;  %v740_v24 = vld [vmem:[#allocation7 + $0x118] sm:$0xff]  ;;  %1394 = vmatprep.subr.bf16.mxu1 %v1393_v19  ;;  %v755_v19 = vld [vmem:[#allocation7 + $0x190] sm:$0xff]  ;;  %v762_v33 = vld [vmem:[#allocation7 + $0x1c8] sm:$0xff] }
  0xc9   : > { %1314 = vmatprep.subr.bf16.mxu0 %v1313_v27  ;;  %v485_v27 = vld [vmem:[#allocation2 + $0x110] sm:$0xff]  ;;  %v1397_v31 = vpack.c.bf16 %v740_v24, %v738_v23  ;;  %v1353_v23 = vpack.c.bf16 %v506_v15, %v504_v14  ;;  %v503_v24 = vld [vmem:[#allocation2 + $0x1a0] sm:$0xff]  ;;  %v1415_v28 = vpack.c.bf16 %v755_v19, %v753_v18  ;;  %v768_v52 = vld [vmem:[#allocation7 + $0x1f8] sm:$0xff] }
  0xca   : > { %v1335_v34 = vpack.c.bf16 %v485_v27, %v483_v26  ;;  %v508_v26 = vld [vmem:[#allocation2 + $0x1c8] sm:$0xff]  ;;  %v510_v27 = vld [vmem:[#allocation2 + $0x1d8] sm:$0xff]  ;;  %v511_v44 = vld [vmem:[#allocation2 + $0x1e0] sm:$0xff] }
  0xcb   : > { %1396 = vmatpush1.bf16.msra.mxu1 %v1395_v30  ;;  %v757_v30 = vld [vmem:[#allocation7 + $0x1a0] sm:$0xff]  ;;  %v855_v58 = vld [vmem:[#allocation8 + $0x8] sm:$0xff]  ;;  %v924_v7 = vld [vmem:[#allocation10 + $0x30] sm:$0xff] }
  0xcc   : > { %1316 = vmatpush1.bf16.msra.mxu0 %v1315_v36  ;;  %v744_v36 = vld [vmem:[#allocation7 + $0x138] sm:$0xff]  ;;  %1398 = vmatprep.subr.bf16.mxu1 %v1397_v31  ;;  %v759_v31 = vld [vmem:[#allocation7 + $0x1b0] sm:$0xff]  ;;  %v923_v3 = vld [vmem:[#allocation10 + $0x28] sm:$0xff] }
  0xcd   : > { %1318 = vmatprep.subr.bf16.mxu0 %v1317_v39  ;;  %v489_v39 = vld [vmem:[#allocation2 + $0x130] sm:$0xff]  ;;  %v1401_v43 = vpack.c.bf16 %v744_v36, %v742_v35  ;;  %v1357_v35 = vpack.c.bf16 %v510_v27, %v508_v26  ;;  %v507_v36 = vld [vmem:[#allocation2 + $0x1c0] sm:$0xff]  ;;  %v1419_v40 = vpack.c.bf16 %v759_v31, %v757_v30  ;;  %v931_v15 = vld [vmem:[#allocation10 + $0x68] sm:$0xff] }
  0xce   : > { %v1339_v46 = vpack.c.bf16 %v489_v39, %v487_v38  ;;  %v512_v38 = vld [vmem:[#allocation2 + $0x1e8] sm:$0xff]  ;;  %v514_v39 = vld [vmem:[#allocation2 + $0x1f8] sm:$0xff]  ;;  %v932_v19 = vld [vmem:[#allocation10 + $0x70] sm:$0xff] }
  0xcf   : > { %1400 = vmatpush1.bf16.msra.mxu1 %v1399_v42  ;;  %v939_v27 = vld [vmem:[#allocation10 + $0xa8] sm:$0xff]  ;;  %v940_v31 = vld [vmem:[#allocation10 + $0xb0] sm:$0xff] }
  0xd0   : > { %1320 = vmatpush1.bf16.msra.mxu0 %v1319_v48  ;;  %v748_v48 = vld [vmem:[#allocation7 + $0x158] sm:$0xff]  ;;  %1402 = vmatprep.subr.bf16.mxu1 %v1401_v43  ;;  %v1361_v43 = vpack.c.bf16 %v514_v39, %v512_v38  ;;  %v691_v39 = vlaneseq }
  0xd1   : > { %1322 = vmatprep.subr.bf16.mxu0 %v1321_v51  ;;  %v493_v51 = vld [vmem:[#allocation2 + $0x150] sm:$0xff]  ;;  %v1405_v55 = vpack.c.bf16 %v748_v48, %v746_v47  ;;  %v448_v47 = vld [vmem:[%s2114_s16] sm:$0xff]  ;;  %s1768_s16 = scalar_lea.vmem %s1767_s13, 512 }
  0xd2   : > { %v1343_v59 = vpack.c.bf16 %v493_v51, %v491_v50  ;;  %v761_v48 = vld [vmem:[#allocation7 + $0x1c0] sm:$0xff]  ;;  %v766_v51 = vld [vmem:[#allocation7 + $0x1e8] sm:$0xff]  ;;  %p1770_p9 = scmp.lt.s32.totalorder %s1768_s16, %s1762_s3 }
  0xd3   : > { %1404 = vmatpush1.bf16.msra.mxu1 %v1403_v54  ;;  %v1425_v53 = vpack.c.bf16 %v768_v52, %v766_v51  ;;  %v765_v54 = vld [vmem:[#allocation7 + $0x1e0] sm:$0xff]  ;;  %v859_v52 = vld [vmem:[#allocation8 + $0x28] sm:$0xff] }
  0xd4   : > { %1324 = vmatpush1.bf16.msra.mxu0 %v1323_v61  ;;  %v752_v61 = vld [vmem:[#allocation7 + $0x178] sm:$0xff]  ;;  %1406 = vmatprep.subr.bf16.mxu1 %v1405_v55  ;;  %v767_v55 = vld [vmem:[#allocation7 + $0x1f0] sm:$0xff]  ;;  %p1771_p5 = por %p1770_p9, %p1769_p6 }
  0xd5   : > { %1326 = vmatprep.subr.bf16.mxu0 %v1325_v1  ;;  %v497_v1 = vld [vmem:[#allocation2 + $0x170] sm:$0xff]  ;;  %v1409_v5 = vpack.c.bf16 %v752_v61, %v750_v60  ;;  %v1427_v57 = vpack.c.bf16 %v767_v55, %v765_v54  ;;  %v919_v61 = vld [vmem:[#allocation10 + $0x8] sm:$0xff] }
  0xd6   : > { %v1347_v8 = vpack.c.bf16 %v497_v1, %v495_v63  ;;  %v918_v63 = vld [vmem:[#allocation10] sm:$0xff]  ;;  %v920_v1 = vld [vmem:[#allocation10 + $0x10] sm:$0xff]  ;;  %p1772_p0 = pnand %p1771_p5, %p1765_p1 }
  0xd7   : > { %1408 = vmatpush1.bf16.msra.mxu1 %v1407_v4  ;;  %v1431_v2 = vpack.c.bf16 %v920_v1, %v918_v63  ;;  %v925_v4 = vld [vmem:[#allocation10 + $0x38] sm:$0xff]  ;;  %v862_v1 = vld [vmem:[#allocation8 + $0x40] sm:$0xff] }
  0xd8   : > { %1328 = vmatpush1.bf16.msra.mxu0 %v1327_v10  ;;  %v756_v10 = vld [vmem:[#allocation7 + $0x198] sm:$0xff]  ;;  %1410 = vmatprep.subr.bf16.mxu1 %v1409_v5  ;;  %v922_v5 = vld [vmem:[#allocation10 + $0x20] sm:$0xff]  ;;  %v1433_v6 = vpack.c.bf16 %v925_v4, %v923_v3  ;;  %v867_v3 = vld [vmem:[#allocation8 + $0x68] sm:$0xff] }
  0xd9   : > { %1330 = vmatprep.subr.bf16.mxu0 %v1329_v13  ;;  %v501_v13 = vld [vmem:[#allocation2 + $0x190] sm:$0xff]  ;;  %v1413_v17 = vpack.c.bf16 %v756_v10, %v754_v9  ;;  %v927_v9 = vld [vmem:[#allocation10 + $0x48] sm:$0xff]  ;;  %v929_v10 = vld [vmem:[#allocation10 + $0x58] sm:$0xff] }
  0xda   : > { %v1351_v20 = vpack.c.bf16 %v501_v13, %v499_v12  ;;  %v1437_v12 = vpack.c.bf16 %v929_v10, %v927_v9  ;;  %v928_v13 = vld [vmem:[#allocation10 + $0x50] sm:$0xff]  ;;  %v869_v4 = vld [vmem:[#allocation8 + $0x78] sm:$0xff]  ;;  %v871_v9 = vld [vmem:[#allocation8 + $0x88] sm:$0xff] }
  0xdb   : > { %1412 = vmatpush1.bf16.msra.mxu1 %v1411_v16  ;;  %v933_v16 = vld [vmem:[#allocation10 + $0x78] sm:$0xff] }
  0xdc   : > { %1332 = vmatpush1.bf16.msra.mxu0 %v1331_v22  ;;  %v760_v22 = vld [vmem:[#allocation7 + $0x1b8] sm:$0xff]  ;;  %1414 = vmatprep.subr.bf16.mxu1 %v1413_v17  ;;  %v930_v17 = vld [vmem:[#allocation10 + $0x60] sm:$0xff]  ;;  %v1441_v18 = vpack.c.bf16 %v933_v16, %v931_v15  ;;  %v875_v15 = vld [vmem:[#allocation8 + $0xa8] sm:$0xff] }
  0xdd   : > { %1334 = vmatprep.subr.bf16.mxu0 %v1333_v25  ;;  %v505_v25 = vld [vmem:[#allocation2 + $0x1b0] sm:$0xff]  ;;  %v1417_v29 = vpack.c.bf16 %v760_v22, %v758_v21  ;;  %v935_v21 = vld [vmem:[#allocation10 + $0x88] sm:$0xff]  ;;  %v937_v22 = vld [vmem:[#allocation10 + $0x98] sm:$0xff] }
  0xde   : > { %v1355_v32 = vpack.c.bf16 %v505_v25, %v503_v24  ;;  %v1445_v24 = vpack.c.bf16 %v937_v22, %v935_v21  ;;  %v936_v25 = vld [vmem:[#allocation10 + $0x90] sm:$0xff]  ;;  %v873_v10 = vld [vmem:[#allocation8 + $0x98] sm:$0xff]  ;;  %v879_v21 = vld [vmem:[#allocation8 + $0xc8] sm:$0xff] }
  0xdf   : > { %1416 = vmatpush1.bf16.msra.mxu1 %v1415_v28  ;;  %v941_v28 = vld [vmem:[#allocation10 + $0xb8] sm:$0xff] }
  0xe0   : > { %1336 = vmatpush1.bf16.msra.mxu0 %v1335_v34  ;;  %v764_v34 = vld [vmem:[#allocation7 + $0x1d8] sm:$0xff]  ;;  %1418 = vmatprep.subr.bf16.mxu1 %v1417_v29  ;;  %v938_v29 = vld [vmem:[#allocation10 + $0xa0] sm:$0xff]  ;;  %v1449_v30 = vpack.c.bf16 %v941_v28, %v939_v27  ;;  %v883_v27 = vld [vmem:[#allocation8 + $0xe8] sm:$0xff] }
  0xe1   : > { %1338 = vmatprep.subr.bf16.mxu0 %v1337_v37  ;;  %v509_v37 = vld [vmem:[#allocation2 + $0x1d0] sm:$0xff]  ;;  %v1421_v41 = vpack.c.bf16 %v764_v34, %v762_v33  ;;  %v943_v33 = vld [vmem:[#allocation10 + $0xc8] sm:$0xff]  ;;  %v945_v34 = vld [vmem:[#allocation10 + $0xd8] sm:$0xff] }
  0xe2   : > { %v1359_v42 = vpack.c.bf16 %v509_v37, %v507_v36  ;;  %v1453_v36 = vpack.c.bf16 %v945_v34, %v943_v33  ;;  %v944_v37 = vld [vmem:[#allocation10 + $0xd0] sm:$0xff]  ;;  %v877_v16 = vld [vmem:[#allocation8 + $0xb8] sm:$0xff]  ;;  %v887_v33 = vld [vmem:[#allocation8 + $0x108] sm:$0xff] }
  0xe3   : > { %1420 = vmatpush1.bf16.msra.mxu1 %v1419_v40  ;;  %v692_v40 = vshrl.u32 %v691_v39, 7  ;;  %v881_v22 = vld [vmem:[#allocation8 + $0xd8] sm:$0xff]  ;;  %v891_v39 = vld [vmem:[#allocation8 + $0x128] sm:$0xff] }
  0xe4   : > { %1340 = vmatpush1.bf16.msra.mxu0 %v1339_v46  ;;  %1422 = vmatprep.subr.bf16.mxu1 %v1421_v41  ;;  %v1363_v46 = vpack.c.bf16 %v513_v45, %v511_v44  ;;  %v885_v28 = vld [vmem:[#allocation8 + $0xf8] sm:$0xff] }
  0xe5   : > { %1342 = vmatprep.subr.bf16.mxu0 %v1341_v49  ;;  %v763_v49 = vld [vmem:[#allocation7 + $0x1d0] sm:$0xff]  ;;  %v2122_v41 = vsub.s32 0, %v692_v40  ;;  %v889_v34 = vld [vmem:[#allocation8 + $0x118] sm:$0xff] }
  0xe6   : > { %v1423_v50 = vpack.c.bf16 %v763_v49, %v761_v48  ;;  %v854_v49 = vld [vmem:[#allocation8] sm:$0xff] }
  0xe8   : > { %1344 = vmatpush1.bf16.msra.mxu0 %v1343_v59  ;;  %1424 = vmatpush1.bf16.msra.mxu1 %v1423_v50  ;;  %v857_v59 = vld [vmem:[#allocation8 + $0x18] sm:$0xff]  ;;  %v856_v50 = vld [vmem:[#allocation8 + $0x10] sm:$0xff] }
  0xe9   : > { %1346 = vmatprep.subr.bf16.mxu0 %v1345_v62  ;;  %1426 = vmatprep.subr.bf16.mxu1 %v1425_v53  ;;  %v1461_v60 = vpack.c.bf16 %v857_v59, %v855_v58  ;;  %v921_v62 = vld [vmem:[#allocation10 + $0x18] sm:$0xff]  ;;  %v1463_v55 = vpack.c.bf16 %v856_v50, %v854_v49  ;;  %v858_v59 = vld [vmem:[#allocation8 + $0x20] sm:$0xff] }
  0xea   : > { %v861_v53 = vld [vmem:[#allocation8 + $0x38] sm:$0xff] }
  0xeb   : > { %v1465_v58 = vpack.c.bf16 %v861_v53, %v859_v52  ;;  %v896_v52 = vld [vmem:[#allocation8 + $0x150] sm:$0xff]  ;;  %v899_v53 = vld [vmem:[#allocation8 + $0x168] sm:$0xff] }
  0xec   : > { %1348 = vmatpush1.bf16.msra.mxu0 %v1347_v8  ;;  %1428 = vmatpush1.bf16.msra.mxu1 %v1427_v57  ;;  %v1435_v8 = vpack.c.bf16 %v924_v7, %v922_v5  ;;  %v866_v7 = vld [vmem:[#allocation8 + $0x60] sm:$0xff] }
  0xed   : > { %1350 = vmatprep.subr.bf16.mxu0 %v1349_v11  ;;  %1462 = vmatprep.subr.bf16.mxu1 %v1461_v60  ;;  %v926_v11 = vld [vmem:[#allocation10 + $0x40] sm:$0xff]  ;;  %v860_v60 = vld [vmem:[#allocation8 + $0x30] sm:$0xff] }
  0xee   : > { %v1439_v14 = vpack.c.bf16 %v928_v13, %v926_v11  ;;  %v1467_v63 = vpack.c.bf16 %v860_v60, %v858_v59  ;;  %v870_v13 = vld [vmem:[#allocation8 + $0x80] sm:$0xff]  ;;  %v900_v59 = vld [vmem:[#allocation8 + $0x170] sm:$0xff]  ;;  %v903_v60 = vld [vmem:[#allocation8 + $0x188] sm:$0xff] }
  0xf0   : > { %1352 = vmatpush1.bf16.msra.mxu0 %v1351_v20  ;;  %v1443_v20 = vpack.c.bf16 %v932_v19, %v930_v17  ;;  %v874_v19 = vld [vmem:[#allocation8 + $0xa0] sm:$0xff] }
  0xf1   : > { %1354 = vmatprep.subr.bf16.mxu0 %v1353_v23  ;;  %v934_v23 = vld [vmem:[#allocation10 + $0x80] sm:$0xff] }
  0xf2   : > { %v1447_v26 = vpack.c.bf16 %v936_v25, %v934_v23  ;;  %v878_v25 = vld [vmem:[#allocation8 + $0xc0] sm:$0xff] }
  0xf4   : > { %1356 = vmatpush1.bf16.msra.mxu0 %v1355_v32  ;;  %v1451_v32 = vpack.c.bf16 %v940_v31, %v938_v29  ;;  %v882_v31 = vld [vmem:[#allocation8 + $0xe0] sm:$0xff] }
  0xf5   : > { %1358 = vmatprep.subr.bf16.mxu0 %v1357_v35  ;;  %v942_v35 = vld [vmem:[#allocation10 + $0xc0] sm:$0xff] }
  0xf6   : > { %v1455_v38 = vpack.c.bf16 %v944_v37, %v942_v35  ;;  %v886_v37 = vld [vmem:[#allocation8 + $0x100] sm:$0xff] }
  0xf8   : > { %1360 = vmatpush1.bf16.msra.mxu0 %v1359_v42  ;;  %v689_v42 = vld [vmem:[%s2193_s4] sm:$0x3] }
  0xf9   : > { %1362 = vmatprep.subr.bf16.mxu0 %v1361_v43  ;;  %v2127_v43 = vsub.s32 1, %v692_v40  ;;  %v694_v44 = vrot.slane %v689_v42, %v2122_v41  ;;  %v893_v40 = vld [vmem:[#allocation8 + $0x138] sm:$0xff] }
  0xfb   : > { %v698_v45 = vrot.slane %v689_v42, %v2127_v43 }
  0xfc   : > { %1364 = vmatpush1.bf16.msra.mxu0 %v1363_v46 }
  0xff   : > { %683 = vmatmul.mubr.f32.vlgmr.msra.gmra.mrb[0].mxu0 %v448_v47 }
 0x100   : > { %1014 = vmatprep.mubr.f32.mxu0 %v1845_v0  ;;  %v1429_v0 = vpack.c.bf16 %v921_v62, %v919_v61  ;;  %v863_v61 = vld [vmem:[#allocation8 + $0x48] sm:$0xff]  ;;  %v865_v62 = vld [vmem:[#allocation8 + $0x58] sm:$0xff] }
 0x102   : > { %1430 = vmatprep.subr.bf16.mxu0 %v1429_v0  ;;  %v1469_v0 = vpack.c.bf16 %v865_v62, %v863_v61  ;;  %v905_v61 = vld [vmem:[#allocation8 + $0x198] sm:$0xff] }
 0x103   : > { %1432 = vmatpush1.bf16.msra.mxu0 %v1431_v2  ;;  %v864_v2 = vld [vmem:[#allocation8 + $0x50] sm:$0xff] }
 0x104   : > { %1434 = vmatprep.subr.bf16.mxu0 %v1433_v6  ;;  %v1471_v5 = vpack.c.bf16 %v864_v2, %v862_v1  ;;  %v1473_v6 = vpack.c.bf16 %v869_v4, %v867_v3  ;;  %v904_v1 = vld [vmem:[#allocation8 + $0x190] sm:$0xff]  ;;  %v907_v2 = vld [vmem:[#allocation8 + $0x1a8] sm:$0xff]  ;;  %v909_v3 = vld [vmem:[#allocation8 + $0x1b8] sm:$0xff] }
 0x107   : > { %1436 = vmatpush1.bf16.msra.mxu0 %v1435_v8  ;;  %v868_v8 = vld [vmem:[#allocation8 + $0x70] sm:$0xff] }
 0x108   : > { %1438 = vmatprep.subr.bf16.mxu0 %v1437_v12  ;;  %v1475_v11 = vpack.c.bf16 %v868_v8, %v866_v7  ;;  %v1477_v12 = vpack.c.bf16 %v873_v10, %v871_v9  ;;  %v908_v7 = vld [vmem:[#allocation8 + $0x1b0] sm:$0xff]  ;;  %v911_v8 = vld [vmem:[#allocation8 + $0x1c8] sm:$0xff]  ;;  %v913_v9 = vld [vmem:[#allocation8 + $0x1d8] sm:$0xff] }
 0x10b   : > { %1440 = vmatpush1.bf16.msra.mxu0 %v1439_v14  ;;  %v872_v14 = vld [vmem:[#allocation8 + $0x90] sm:$0xff] }
 0x10c   : > { %1442 = vmatprep.subr.bf16.mxu0 %v1441_v18  ;;  %v1479_v17 = vpack.c.bf16 %v872_v14, %v870_v13  ;;  %v1481_v18 = vpack.c.bf16 %v877_v16, %v875_v15  ;;  %v912_v13 = vld [vmem:[#allocation8 + $0x1d0] sm:$0xff]  ;;  %v947_v15 = vld [vmem:[#allocation10 + $0xe8] sm:$0xff]  ;;  %v949_v16 = vld [vmem:[#allocation10 + $0xf8] sm:$0xff] }
 0x10f   : > { %1444 = vmatpush1.bf16.msra.mxu0 %v1443_v20  ;;  %v876_v20 = vld [vmem:[#allocation8 + $0xb0] sm:$0xff] }
 0x110   : > { %1446 = vmatprep.subr.bf16.mxu0 %v1445_v24  ;;  %v1483_v23 = vpack.c.bf16 %v876_v20, %v874_v19  ;;  %v1485_v24 = vpack.c.bf16 %v881_v22, %v879_v21  ;;  %v948_v19 = vld [vmem:[#allocation10 + $0xf0] sm:$0xff]  ;;  %v915_v20 = vld [vmem:[#allocation8 + $0x1e8] sm:$0xff]  ;;  %v917_v22 = vld [vmem:[#allocation8 + $0x1f8] sm:$0xff] }
 0x113   : > { %1448 = vmatpush1.bf16.msra.mxu0 %v1447_v26  ;;  %v880_v26 = vld [vmem:[#allocation8 + $0xd0] sm:$0xff] }
 0x114   : > { %1450 = vmatprep.subr.bf16.mxu0 %v1449_v30  ;;  %v1487_v29 = vpack.c.bf16 %v880_v26, %v878_v25  ;;  %v1489_v30 = vpack.c.bf16 %v885_v28, %v883_v27  ;;  %v1521_v25 = vpack.c.bf16 %v917_v22, %v915_v20  ;;  %v769_v27 = vld [vmem:[%s2195_s6] sm:$0x3] }
 0x115   : > { %v774_v28 = vrot.slane %v769_v27, %v2122_v41 }
 0x117   : > { %1452 = vmatpush1.bf16.msra.mxu0 %v1451_v32  ;;  %v884_v32 = vld [vmem:[#allocation8 + $0xf0] sm:$0xff] }
 0x118   : > { %1454 = vmatprep.subr.bf16.mxu0 %v1453_v36  ;;  %v1491_v35 = vpack.c.bf16 %v884_v32, %v882_v31  ;;  %v1493_v36 = vpack.c.bf16 %v889_v34, %v887_v33 }
 0x11b   : > { %1456 = vmatpush1.bf16.msra.mxu0 %v1455_v38  ;;  %v888_v38 = vld [vmem:[#allocation8 + $0x110] sm:$0xff] }
 0x11c   : > { %v1495_v42 = vpack.c.bf16 %v888_v38, %v886_v37 }
 0x1d2   : > { %v684_v46 = vpop.f32.mrb[0].mxu0 }
 0x1d3   : > { %v701_v47 = vadd.f32 %v694_v44, %v684_v46  ;;  %v686_v48 = vpop.f32.mrb[1].mxu0  ;;  %v1497_v44 = vpack.c.bf16 %v893_v40, %v891_v39  ;;  %v892_v46 = vld [vmem:[#allocation8 + $0x130] sm:$0xff] }
 0x1d4   : > { %v702_v51 = vadd.f32 %v698_v45, %v686_v48  ;;  %v890_v45 = vld [vmem:[#allocation8 + $0x120] sm:$0xff]  ;;  %v897_v48 = vld [vmem:[#allocation8 + $0x158] sm:$0xff] }
 0x1d5   : > { %v703_v57 = vmax.f32 %v701_v47, 0.0  ;;  %v895_v47 = vld [vmem:[#allocation8 + $0x148] sm:$0xff]  ;;  %v1499_v49 = vpack.c.bf16 %v892_v46, %v890_v45 }
 0x1d6   : > { %v704_v54 = vmax.f32 %v702_v51, 0.0  ;;  %v1501_v50 = vpack.c.bf16 %v897_v48, %v895_v47  ;;  %v894_v51 = vld [vmem:[#allocation8 + $0x140] sm:$0xff] }
 0x1d8   : > { %845 = vmatprep.mubr.f32.mxu1 %v704_v54  ;;  %v901_v54 = vld [vmem:[#allocation8 + $0x178] sm:$0xff] }
 0x1d9   : > { %846 = vmatmul.mubr.f32.vlgmr.msra.gmra.mrb[0].mxu1 %v703_v57  ;;  %v1505_v57 = vpack.c.bf16 %v901_v54, %v899_v53 }
 0x1da   : > { %1464 = vmatpush1.bf16.msra.mxu1 %v1463_v55  ;;  %v1503_v55 = vpack.c.bf16 %v896_v52, %v894_v51 }
 0x1db   : > { %1466 = vmatprep.subr.bf16.mxu1 %v1465_v58  ;;  %v898_v58 = vld [vmem:[#allocation8 + $0x160] sm:$0xff] }
 0x1dc   : > { %v1507_v62 = vpack.c.bf16 %v900_v59, %v898_v58 }
 0x1de   : > { %1468 = vmatpush1.bf16.msra.mxu1 %v1467_v63  ;;  %v1509_v63 = vpack.c.bf16 %v905_v61, %v903_v60 }
 0x1df   : > { %1470 = vmatprep.subr.bf16.mxu1 %v1469_v0  ;;  %v902_v0 = vld [vmem:[#allocation8 + $0x180] sm:$0xff] }
 0x1e0   : > { %v1511_v4 = vpack.c.bf16 %v904_v1, %v902_v0 }
 0x1e2   : > { %1472 = vmatpush1.bf16.msra.mxu1 %v1471_v5  ;;  %v1513_v5 = vpack.c.bf16 %v909_v3, %v907_v2 }
 0x1e3   : > { %1474 = vmatprep.subr.bf16.mxu1 %v1473_v6  ;;  %v906_v6 = vld [vmem:[#allocation8 + $0x1a0] sm:$0xff] }
 0x1e4   : > { %v1515_v10 = vpack.c.bf16 %v908_v7, %v906_v6 }
 0x1e6   : > { %1476 = vmatpush1.bf16.msra.mxu1 %v1475_v11  ;;  %v1517_v11 = vpack.c.bf16 %v913_v9, %v911_v8 }
 0x1e7   : > { %1478 = vmatprep.subr.bf16.mxu1 %v1477_v12  ;;  %v910_v12 = vld [vmem:[#allocation8 + $0x1c0] sm:$0xff] }
 0x1e8   : > { %v1519_v14 = vpack.c.bf16 %v912_v13, %v910_v12 }
 0x1ea   : > { %1480 = vmatpush1.bf16.msra.mxu1 %v1479_v17  ;;  %v1457_v17 = vpack.c.bf16 %v949_v16, %v947_v15 }
 0x1eb   : > { %1482 = vmatprep.subr.bf16.mxu1 %v1481_v18  ;;  %v946_v18 = vld [vmem:[#allocation10 + $0xe0] sm:$0xff] }
 0x1ec   : > { %v1459_v21 = vpack.c.bf16 %v948_v19, %v946_v18  ;;  %1458 = vmatprep.subr.bf16.mxu0 %v1457_v17 }
 0x1ee   : > { %1484 = vmatpush1.bf16.msra.mxu1 %v1483_v23  ;;  %v914_v23 = vld [vmem:[#allocation8 + $0x1e0] sm:$0xff]  ;;  %1460 = vmatpush1.bf16.msra.mxu0 %v1459_v21 }
 0x1ef   : > { %1486 = vmatprep.subr.bf16.mxu1 %v1485_v24  ;;  %v916_v24 = vld [vmem:[#allocation8 + $0x1f0] sm:$0xff] }
 0x1f0   : > { %v1523_v26 = vpack.c.bf16 %v916_v24, %v914_v23 }
 0x1f1   : > { %1015 = vmatmul.mubr.f32.vlgmr.msra.gmra.mrb[2].mxu0 %v2116_v56  ;;  %v1092_v56 = vld [vmem:[%s2198_s9] sm:$0x3] }
 0x1f2   : > { %1488 = vmatpush1.bf16.msra.mxu1 %v1487_v29  ;;  %v778_v29 = vrot.slane %v769_v27, %v2127_v43  ;;  %v1097_v38 = vrot.slane %v1092_v56, %v2122_v41  ;;  %v1101_v40 = vrot.slane %v1092_v56, %v2127_v43 }
 0x1f3   : > { %1490 = vmatprep.subr.bf16.mxu1 %v1489_v30 }
 0x1f6   : > { %1492 = vmatpush1.bf16.msra.mxu1 %v1491_v35 }
 0x1f7   : > { %1494 = vmatprep.subr.bf16.mxu1 %v1493_v36 }
 0x1fa   : > { %1496 = vmatpush1.bf16.msra.mxu1 %v1495_v42 }
 0x1fb   : > { %1498 = vmatprep.subr.bf16.mxu1 %v1497_v44 }
 0x1fe   : > { %1500 = vmatpush1.bf16.msra.mxu1 %v1499_v49 }
 0x1ff   : > { %1502 = vmatprep.subr.bf16.mxu1 %v1501_v50 }
 0x202   : > { %1504 = vmatpush1.bf16.msra.mxu1 %v1503_v55 }
 0x203   : > { %1506 = vmatprep.subr.bf16.mxu1 %v1505_v57 }
 0x206   : > { %1508 = vmatpush1.bf16.msra.mxu1 %v1507_v62 }
 0x207   : > { %1510 = vmatprep.subr.bf16.mxu1 %v1509_v63 }
 0x20a   : > { %1512 = vmatpush1.bf16.msra.mxu1 %v1511_v4 }
 0x20b   : > { %1514 = vmatprep.subr.bf16.mxu1 %v1513_v5 }
 0x20e   : > { %1516 = vmatpush1.bf16.msra.mxu1 %v1515_v10 }
 0x20f   : > { %1518 = vmatprep.subr.bf16.mxu1 %v1517_v11 }
 0x212   : > { %1520 = vmatpush1.bf16.msra.mxu1 %v1519_v14 }
 0x213   : > { %1522 = vmatprep.subr.bf16.mxu1 %v1521_v25 }
 0x216   : > { %1524 = vmatpush1.bf16.msra.mxu1 %v1523_v26 }
 0x2ac   : > { %v847_v30 = vpop.f32.mrb[0].mxu1 }
 0x2ad   : > { %v848_v31 = vadd.f32 %v847_v30, %v774_v28  ;;  %v849_v32 = vpop.f32.mrb[1].mxu1 }
 0x2ae   : > { %v850_v33 = vadd.f32 %v849_v32, %v778_v29 }
 0x2af   : > { %v852_v35 = vmax.f32 %v848_v31, 0.0 }
 0x2b0   : > { %v853_v34 = vmax.f32 %v850_v33, 0.0 }
 0x2b2   : > { %1085 = vmatprep.mubr.f32.mxu1 %v853_v34 }
 0x2b3   : > { %1086 = vmatmul.mubr.f32.vlgmr.msra.gmra.mrb[2].mxu1 %v852_v35 }
 0x2c4   : > { %v1016_v36 = vpop.f32.mrb[2].mxu0 }
 0x2c5   : > { %v1018_v37 = vpop.f32.mrb[3].mxu0 }
 0x386   : > { %v1087_v39 = vpop.f32.mrb[2].mxu1 }
 0x387   : > { %v1088_v42 = vadd.f32 %v1087_v39, %v1016_v36  ;;  %v1089_v44 = vpop.f32.mrb[3].mxu1 }
 0x388   : > { %v1090_v45 = vadd.f32 %v1089_v44, %v1018_v37 }
 0x389   : > { %v1104_v46 = vadd.f32 %v1097_v38, %v1088_v42 }
 0x38a   : > { %v1105_v47 = vadd.f32 %v1101_v40, %v1090_v45 }
 0x38b   : > { %1106 = vst [vmem:[%s438_s15] sm:$0xff] %v1104_v46 }
 0x38c   : > { %1107 = vst [vmem:[%s438_s15 + $0x8] sm:$0xff] %v1105_v47 }
 0x38d   : > { %1775 = shalt.err (!%p1772_p0)
}
 0x38e   : > { %s1776_s24 = scalar_lea.hbm %s2147_s20, 256  ;;  %s1780_s11 = scalar_lea.hbm %s2199_s10, 512 }
 0x38f   : > { %p1777_p10 = scmp.ne.s32.totalorder %s2147_s20, %s1776_s24  ;;  %p1781_p4 = scmp.lt.u32.totalorder %s2147_s20, %s2199_s10 }
 0x390   : > { %p1782_p12 = scmp.lt.u32.totalorder %s1780_s11, %s1776_s24  ;;  %p1784_p8 = scmp.lt.u32.totalorder %s1776_s24, %s2147_s20 }
 0x391   : > { %p1778_p2 = pnand %p1777_p10, %p2229_p11 }
 0x392   : > { %p1783_p7 = por %p1782_p12, %p1781_p4 }
 0x393   : > { %p1779_p3 = pneg %p1778_p2 }
 0x394   : > { %p1785_p13 = por %p1784_p8, %p1783_p7 }
 0x396   : > { %p1786_p1 = pnand %p1785_p13, %p1779_p3 }
 0x398   : > { %1789 = shalt.err (!%p1786_p1)
}
 0x399   : > { %1549 = dma.vmem_to_hbm [thread:$0]  (%p2229_p11), %s2149_s25, 256, %s2147_s20, %s1109_s21  }
 0x39a PF: > { %s2230_s30 = sld [smem:[#allocation18_spill]]  ;;  %s2231_s19 = sld [smem:[#allocation16_spill]] }
 0x39b   : > { %s2232_s12 = sld [smem:[#allocation21_spill]] }
 0x3a0   : > { %p1581_p6 = scmp.ge.s32.totalorder %s2230_s30, 2  ;;  %s1135_s15 = sand.u32 1, %s2231_s19  }
 0x3a1   : > { %p2233_p9 = scmp.ne.s32.totalorder %s2232_s12, 0  ;;  %s1136_s28 = scalar_lea.sflag [#allocation4], %s1135_s15 }
 0x3a3   : > { %p1568_p5 = pnand %p1581_p6, %p2233_p9 }
 0x3a5   : > { %1819 = dma.done.wait (!%p1568_p5), %s1136_s28, 256  }
 0x3a6   : > { %1821 = vsyncadd (!%p1568_p5), %s1136_s28, 4294967040  ;;  %s2234_s16 = sld [smem:[#allocation19_spill]]  ;;  %s2235_s18 = sld [smem:[#allocation17_spill]] }
 0x3a7   : > { %s2236_s15 = sld [smem:[#allocation20_spill]]  ;;  %s2237_s13 = smov %s1828_s14 }
 0x3ac   : > { %p23_p0 = scmp.ge.s32.totalorder %s2234_s16, 4   ;;  %s2238_s14 = smov %s2235_s18 }
 0x3ae   :  { %25 = sbr.rel (!%p23_p0) target bundleno = 8 (0x8), region = 119 }
 0x3b5   :  { %1141 = vsyncpa [#allocation3], 1 }
 0x3b6   :  { %1143 = vsyncpa [#allocation3 + $0x1], 1 }
 0x3b7   :  { %1144 = vsyncpa [#allocation6], 1 }
 0x3b8   :  { %1145 = vsyncpa [#allocation9], 1 }
 0x3b9   :  { %1146 = vsyncpa [#allocation4], 1 }
 0x3ba   :  { %1148 = vsyncpa [#allocation4 + $0x1], 1 }

</bundles_post_ra>
